<compile_context>
chip_gen: v7x
topology: tpu7x:2x2x1
jax: 0.10.0
libtpu: 0.0.40
codegen_flags: <defaults>
</compile_context>

<pallas_src>
import numpy as np
import jax
import jax.numpy as jnp
from jax.experimental import pallas as pl
from jax.experimental.pallas import tpu as pltpu


# ----------------------------- minimal NetworkSpec -----------------------------
class TensorSpec:
    def __init__(self, shape):
        self.shape = tuple(shape)


class NetworkSpec:
    def __init__(self, weight_spec, bias_spec):
        self.weight_spec = weight_spec
        self.bias_spec = bias_spec


class WeightSpaceFeatures:
    def __init__(self, weights, biases):
        self.weights = tuple(weights)
        self.biases = tuple(biases)


# ----------------------------- helpers ------------------------------------------
def _round_up(x: int, m: int) -> int:
    return (x + m - 1) // m * m


def _padded_sizes(P: int, C: int, itemsize: int):
    """Lane/sublane-dense padded sizes and params-axis tile."""
    sublane = max(8, 32 // itemsize)          # 8 for f32, 16 for bf16, 32 for int8
    Cpad = _round_up(C, sublane)
    P128 = _round_up(P, 128)
    if P128 <= 1024:
        TP = P128                             # single lane-dense tile
        Ppad = P128
    else:
        TP = 512                              # sweet spot per measured roofline
        Ppad = _round_up(P, TP)
    return Ppad, Cpad, TP


# ----------------------------- Pallas kernel -----------------------------------
def _transpose_kernel(x_ref, o_ref):
    # x_ref block: (TB, TP, Cpad) -> o_ref block: (TB, Cpad, TP)
    # Unrolled over the (small, static) batch tile: each step is a plain 2-D
    # minor-dims transpose, which Mosaic lowers directly to XLU transposes.
    for b in range(x_ref.shape[0]):
        o_ref[b, :, :] = x_ref[b, :, :].T


def transpose_params_chan(x: jax.Array, tp: int) -> jax.Array:
    """[B, Ppad, Cpad] -> [B, Cpad, Ppad] via a tiled Pallas TPU transpose.

    Requires: Ppad % tp == 0, tp % 128 == 0 (caller pads via _padded_sizes).
    """
    B, P, C = x.shape
    assert P % tp == 0 and tp % 128 == 0, (P, tp)
    itemsize = jnp.dtype(x.dtype).itemsize

    blk_bytes = tp * C * itemsize
    # Fold the whole batch into one block when it is cheap (amortizes grid-step
    # overhead on tiny problems); otherwise one batch row per step.  Per-operand
    # block stays <= ~2 MiB so double-buffered totals fit v7x's scoped VMEM.
    TB = B if B * blk_bytes <= (1 << 21) else 1

    grid = (B // TB, P // tp)
    return pl.pallas_call(
        _transpose_kernel,
        out_shape=jax.ShapeDtypeStruct((B, C, P), x.dtype),
        grid=grid,
        in_specs=[pl.BlockSpec((TB, tp, C), lambda b, j: (b, j, 0))],
        out_specs=pl.BlockSpec((TB, C, tp), lambda b, j: (b, 0, j)),
        compiler_params=pltpu.CompilerParams(
            dimension_semantics=("parallel", "parallel"),
        ),
    )(x)


# ----------------------------- UnflattenWeights --------------------------------
class UnflattenWeights:
    def __init__(self, network_spec: NetworkSpec):
        self.network_spec = network_spec
        self.num_wts, self.num_bs = [], []
        for weight_spec, bias_spec in zip(
            network_spec.weight_spec, network_spec.bias_spec
        ):
            self.num_wts.append(int(np.prod(weight_spec.shape)))
            self.num_bs.append(int(np.prod(bias_spec.shape)))
        self._fwd = jax.jit(self._forward)

    def _forward(self, x: jax.Array):
        # x: [batch, total_params, n_chan]
        B, P, C = x.shape
        itemsize = jnp.dtype(x.dtype).itemsize
        Ppad, Cpad, TP = _padded_sizes(P, C, itemsize)

        xp = x
        if (Ppad, Cpad) != (P, C):
            xp = jnp.pad(x, ((0, 0), (0, Ppad - P), (0, Cpad - C)))

        # Lane-dense tiled transpose; padding is sliced off below.
        xt = transpose_params_chan(xp, TP)          # [B, Cpad, Ppad]

        out_weights, out_biases = [], []
        curr = 0
        for i, (w_spec, b_spec) in enumerate(
            zip(self.network_spec.weight_spec, self.network_spec.bias_spec)
        ):
            nw, nb = self.num_wts[i], self.num_bs[i]
            wt = xt[:, :C, curr:curr + nw].reshape(-1, C, *w_spec.shape)
            out_weights.append(wt)
            curr += nw
            bs = xt[:, :C, curr:curr + nb].reshape(-1, C, *b_spec.shape)
            out_biases.append(bs)
            curr += nb
        return tuple(out_weights), tuple(out_biases)

    def __call__(self, x: jax.Array) -> WeightSpaceFeatures:
        w, b = self._fwd(x)
        return WeightSpaceFeatures(w, b)


# ----------------------------- reference (pure JAX) -----------------------------
def unflatten_ref(x, network_spec):
    n_chan = x.shape[2]
    out_w, out_b = [], []
    curr = 0
    for w_spec, b_spec in zip(network_spec.weight_spec, network_spec.bias_spec):
        nw = int(np.prod(w_spec.shape))
        nb = int(np.prod(b_spec.shape))
        wt = jnp.swapaxes(x[:, curr:curr + nw], 1, 2).reshape(-1, n_chan, *w_spec.shape)
        out_w.append(wt)
        curr += nw
        bs = jnp.swapaxes(x[:, curr:curr + nb], 1, 2).reshape(-1, n_chan, *b_spec.shape)
        out_b.append(bs)
        curr += nb
    return out_w, out_b


# ----------------------------- main ---------------------------------------------
if __name__ == "__main__":
    # Small MLP weight-space spec: (32,16) + (32,)  and  (8,32) + (8,)
    network_spec = NetworkSpec(
        weight_spec=[TensorSpec((32, 16)), TensorSpec((8, 32))],
        bias_spec=[TensorSpec((32,)), TensorSpec((8,))],
    )
    total_params = sum(
        int(np.prod(w.shape)) + int(np.prod(b.shape))
        for w, b in zip(network_spec.weight_spec, network_spec.bias_spec)
    )  # 512 + 32 + 256 + 8 = 808

    batch, n_chan = 2, 4
    key = jax.random.PRNGKey(0)
    x = jax.random.normal(key, (batch, total_params, n_chan), dtype=jnp.float32)

    module = UnflattenWeights(network_spec)
    out = module(x)
    jax.block_until_ready(out.weights)
    jax.block_until_ready(out.biases)

    ref_w, ref_b = unflatten_ref(x, network_spec)
    for got, want in zip(list(out.weights) + list(out.biases), ref_w + ref_b):
        assert got.shape == want.shape, (got.shape, want.shape)
        np.testing.assert_allclose(np.asarray(got), np.asarray(want), rtol=0, atol=0)

    print("KERNEL_OK")
</pallas_src>

<mosaic_0001>
module attributes {stable_mosaic.version = 11 : i64} {
  func.func @_transpose_kernel(%arg0: i32, %arg1: i32, %arg2: memref<2x896x8xf32, #tpu.memory_space<vmem>>, %arg3: memref<2x8x896xf32, #tpu.memory_space<vmem>>) attributes {dimension_semantics = [#tpu.dimension_semantics<parallel>, #tpu.dimension_semantics<parallel>], iteration_bounds = array<i64: 1, 1>, scalar_prefetch = 0 : i64, scratch_operands = 0 : i64, tpu.core_type = #tpu.core_type<tc>, window_params = [{transform_indices = @transform_0, window_bounds = array<i64: 2, 896, 8>}, {transform_indices = @transform_1, window_bounds = array<i64: 2, 8, 896>}]} {
    %c0 = arith.constant 0 : index
    %c0_0 = arith.constant 0 : index
    %c0_1 = arith.constant 0 : index
    %0 = vector.load %arg2[%c0, %c0_0, %c0_1] : memref<2x896x8xf32, #tpu.memory_space<vmem>>, vector<1x896x8xf32>
    %1 = vector.shape_cast %0 : vector<1x896x8xf32> to vector<896x8xf32>
    %2 = tpu.transpose %1, [1, 0] : vector<896x8xf32> -> vector<8x896xf32>
    %c0_2 = arith.constant 0 : index
    %c0_3 = arith.constant 0 : index
    %c0_4 = arith.constant 0 : index
    %3 = vector.load %arg3[%c0_2, %c0_3, %c0_4] : memref<2x8x896xf32, #tpu.memory_space<vmem>>, vector<1x8x896xf32>
    %4 = vector.shape_cast %3 : vector<1x8x896xf32> to vector<8x896xf32>
    %5 = vector.shape_cast %2 : vector<8x896xf32> to vector<1x8x896xf32>
    tpu.vector_store %arg3[%c0_2, %c0_3, %c0_4], %5 {strides = array<i32>} : memref<2x8x896xf32, #tpu.memory_space<vmem>>, vector<1x8x896xf32>,
    %c1 = arith.constant 1 : index
    %c0_5 = arith.constant 0 : index
    %c0_6 = arith.constant 0 : index
    %6 = vector.load %arg2[%c1, %c0_5, %c0_6] : memref<2x896x8xf32, #tpu.memory_space<vmem>>, vector<1x896x8xf32>
    %7 = vector.shape_cast %6 : vector<1x896x8xf32> to vector<896x8xf32>
    %8 = tpu.transpose %7, [1, 0] : vector<896x8xf32> -> vector<8x896xf32>
    %c1_7 = arith.constant 1 : index
    %c0_8 = arith.constant 0 : index
    %c0_9 = arith.constant 0 : index
    %9 = vector.load %arg3[%c1_7, %c0_8, %c0_9] : memref<2x8x896xf32, #tpu.memory_space<vmem>>, vector<1x8x896xf32>
    %10 = vector.shape_cast %9 : vector<1x8x896xf32> to vector<8x896xf32>
    %11 = vector.shape_cast %8 : vector<8x896xf32> to vector<1x8x896xf32>
    tpu.vector_store %arg3[%c1_7, %c0_8, %c0_9], %11 {strides = array<i32>} : memref<2x8x896xf32, #tpu.memory_space<vmem>>, vector<1x8x896xf32>,
    return
  }
  func.func @transform_0(%arg0: i32, %arg1: i32) -> (i32, i32, i32) {
    %c0_i32 = arith.constant 0 : i32
    %c0_i32_0 = arith.constant 0 : i32
    return %arg0, %arg1, %c0_i32 : i32, i32, i32
  }
  func.func @transform_1(%arg0: i32, %arg1: i32) -> (i32, i32, i32) {
    %c0_i32 = arith.constant 0 : i32
    %c0_i32_0 = arith.constant 0 : i32
    return %arg0, %c0_i32, %arg1 : i32, i32, i32
  }
}

</mosaic_0001>

<bundles_post_ra>
// kernel: _forward.1
= control target key start
LH: loop header
LB: loop body
LE: loop exit
PB: predicated region body
PF: predicated region fallthrough
CT: control target
= control target key end

     0   :  { %s1543_s0 = inlined_call_operand.vmem [shape: f32[2,896,8], index: 0, kind: input, shape index: {}]   ;;  %s1544_s1 = inlined_call_operand.vmem [shape: f32[2,8,896], index: 1, kind: output, shape index: {}]  }
   0x1   :  { %v24_v0 = vld [vmem:[%s1543_s0 + $0x80] sm:$0xff]  ;;  %v25_v2 = vld [vmem:[%s1543_s0 + $0x88] sm:$0xff]  ;;  %v26_v4 = vld [vmem:[%s1543_s0 + $0x90] sm:$0xff] }
   0x2   :  { %v8_v1 = vld [vmem:[%s1543_s0] sm:$0xff]  ;;  %152 = vxpose.xlu1.b32.start [1/16] (narrow) %v24_v0, 8  ;;  %v9_v3 = vld [vmem:[%s1543_s0 + $0x8] sm:$0xff]  ;;  %v10_v5 = vld [vmem:[%s1543_s0 + $0x10] sm:$0xff] }
   0x3   :  { %120 = vxpose.xlu0.b32.start [1/16] (narrow) %v8_v1, 8  ;;  %v27_v6 = vld [vmem:[%s1543_s0 + $0x98] sm:$0xff]  ;;  %v28_v8 = vld [vmem:[%s1543_s0 + $0xa0] sm:$0xff]  ;;  %v29_v10 = vld [vmem:[%s1543_s0 + $0xa8] sm:$0xff] }
   0x4   :  { %v11_v7 = vld [vmem:[%s1543_s0 + $0x18] sm:$0xff]  ;;  %v12_v9 = vld [vmem:[%s1543_s0 + $0x20] sm:$0xff]  ;;  %v13_v11 = vld [vmem:[%s1543_s0 + $0x28] sm:$0xff] }
   0x5   :  { %v30_v12 = vld [vmem:[%s1543_s0 + $0xb0] sm:$0xff]  ;;  %v31_v14 = vld [vmem:[%s1543_s0 + $0xb8] sm:$0xff]  ;;  %v32_v16 = vld [vmem:[%s1543_s0 + $0xc0] sm:$0xff] }
   0x6   :  { %153 = vxpose.xlu1.b32.cont [2/16] (narrow) %v25_v2, 8  ;;  %v14_v13 = vld [vmem:[%s1543_s0 + $0x30] sm:$0xff]  ;;  %v15_v15 = vld [vmem:[%s1543_s0 + $0x38] sm:$0xff]  ;;  %v16_v17 = vld [vmem:[%s1543_s0 + $0x40] sm:$0xff] }
   0x7   :  { %121 = vxpose.xlu0.b32.cont [2/16] (narrow) %v9_v3, 8  ;;  %v33_v18 = vld [vmem:[%s1543_s0 + $0xc8] sm:$0xff]  ;;  %v34_v20 = vld [vmem:[%s1543_s0 + $0xd0] sm:$0xff]  ;;  %v35_v22 = vld [vmem:[%s1543_s0 + $0xd8] sm:$0xff] }
   0x8   :  { %v17_v19 = vld [vmem:[%s1543_s0 + $0x48] sm:$0xff]  ;;  %v18_v21 = vld [vmem:[%s1543_s0 + $0x50] sm:$0xff]  ;;  %v19_v23 = vld [vmem:[%s1543_s0 + $0x58] sm:$0xff] }
   0x9   :  { %v36_v24 = vld [vmem:[%s1543_s0 + $0xe0] sm:$0xff]  ;;  %v37_v26 = vld [vmem:[%s1543_s0 + $0xe8] sm:$0xff]  ;;  %v38_v28 = vld [vmem:[%s1543_s0 + $0xf0] sm:$0xff] }
   0xa   :  { %154 = vxpose.xlu1.b32.cont [3/16] (narrow) %v26_v4, 8  ;;  %v20_v25 = vld [vmem:[%s1543_s0 + $0x60] sm:$0xff]  ;;  %v21_v27 = vld [vmem:[%s1543_s0 + $0x68] sm:$0xff]  ;;  %v22_v29 = vld [vmem:[%s1543_s0 + $0x70] sm:$0xff] }
   0xb   :  { %122 = vxpose.xlu0.b32.cont [3/16] (narrow) %v10_v5, 8  ;;  %v39_v30 = vld [vmem:[%s1543_s0 + $0xf8] sm:$0xff]  ;;  %v56_v32 = vld [vmem:[%s1543_s0 + $0x180] sm:$0xff]  ;;  %v57_v34 = vld [vmem:[%s1543_s0 + $0x188] sm:$0xff] }
   0xc   :  { %v23_v31 = vld [vmem:[%s1543_s0 + $0x78] sm:$0xff]  ;;  %v40_v33 = vld [vmem:[%s1543_s0 + $0x100] sm:$0xff]  ;;  %v41_v35 = vld [vmem:[%s1543_s0 + $0x108] sm:$0xff] }
   0xd   :  { %v58_v36 = vld [vmem:[%s1543_s0 + $0x190] sm:$0xff]  ;;  %v59_v38 = vld [vmem:[%s1543_s0 + $0x198] sm:$0xff]  ;;  %v60_v40 = vld [vmem:[%s1543_s0 + $0x1a0] sm:$0xff] }
   0xe   :  { %155 = vxpose.xlu1.b32.cont [4/16] (narrow) %v27_v6, 8  ;;  %v42_v37 = vld [vmem:[%s1543_s0 + $0x110] sm:$0xff]  ;;  %v43_v39 = vld [vmem:[%s1543_s0 + $0x118] sm:$0xff]  ;;  %v44_v41 = vld [vmem:[%s1543_s0 + $0x120] sm:$0xff] }
   0xf   :  { %123 = vxpose.xlu0.b32.cont [4/16] (narrow) %v11_v7, 8  ;;  %v61_v42 = vld [vmem:[%s1543_s0 + $0x1a8] sm:$0xff]  ;;  %v62_v44 = vld [vmem:[%s1543_s0 + $0x1b0] sm:$0xff]  ;;  %v63_v46 = vld [vmem:[%s1543_s0 + $0x1b8] sm:$0xff] }
  0x10   :  { %v45_v43 = vld [vmem:[%s1543_s0 + $0x128] sm:$0xff]  ;;  %v46_v45 = vld [vmem:[%s1543_s0 + $0x130] sm:$0xff]  ;;  %v47_v47 = vld [vmem:[%s1543_s0 + $0x138] sm:$0xff] }
  0x11   :  { %v64_v48 = vld [vmem:[%s1543_s0 + $0x1c0] sm:$0xff]  ;;  %v65_v50 = vld [vmem:[%s1543_s0 + $0x1c8] sm:$0xff]  ;;  %v66_v52 = vld [vmem:[%s1543_s0 + $0x1d0] sm:$0xff] }
  0x12   :  { %156 = vxpose.xlu1.b32.cont [5/16] (narrow) %v28_v8, 8  ;;  %v48_v49 = vld [vmem:[%s1543_s0 + $0x140] sm:$0xff]  ;;  %v49_v51 = vld [vmem:[%s1543_s0 + $0x148] sm:$0xff]  ;;  %v50_v53 = vld [vmem:[%s1543_s0 + $0x150] sm:$0xff] }
  0x13   :  { %124 = vxpose.xlu0.b32.cont [5/16] (narrow) %v12_v9, 8  ;;  %v67_v54 = vld [vmem:[%s1543_s0 + $0x1d8] sm:$0xff]  ;;  %v68_v56 = vld [vmem:[%s1543_s0 + $0x1e0] sm:$0xff]  ;;  %v69_v58 = vld [vmem:[%s1543_s0 + $0x1e8] sm:$0xff] }
  0x14   :  { %v51_v55 = vld [vmem:[%s1543_s0 + $0x158] sm:$0xff]  ;;  %v52_v57 = vld [vmem:[%s1543_s0 + $0x160] sm:$0xff]  ;;  %v53_v59 = vld [vmem:[%s1543_s0 + $0x168] sm:$0xff] }
  0x15   :  { %v70_v60 = vld [vmem:[%s1543_s0 + $0x1f0] sm:$0xff]  ;;  %v71_v62 = vld [vmem:[%s1543_s0 + $0x1f8] sm:$0xff]  ;;  %v88_v0 = vld [vmem:[%s1543_s0 + $0x280] sm:$0xff] }
  0x16   :  { %157 = vxpose.xlu1.b32.cont [6/16] (narrow) %v29_v10, 8  ;;  %v54_v61 = vld [vmem:[%s1543_s0 + $0x170] sm:$0xff]  ;;  %v55_v63 = vld [vmem:[%s1543_s0 + $0x178] sm:$0xff]  ;;  %v72_v1 = vld [vmem:[%s1543_s0 + $0x200] sm:$0xff] }
  0x17   :  { %125 = vxpose.xlu0.b32.cont [6/16] (narrow) %v13_v11, 8  ;;  %v89_v2 = vld [vmem:[%s1543_s0 + $0x288] sm:$0xff]  ;;  %v90_v4 = vld [vmem:[%s1543_s0 + $0x290] sm:$0xff]  ;;  %v91_v6 = vld [vmem:[%s1543_s0 + $0x298] sm:$0xff] }
  0x18   :  { %v73_v3 = vld [vmem:[%s1543_s0 + $0x208] sm:$0xff]  ;;  %v74_v5 = vld [vmem:[%s1543_s0 + $0x210] sm:$0xff]  ;;  %v75_v7 = vld [vmem:[%s1543_s0 + $0x218] sm:$0xff] }
  0x19   :  { %v92_v8 = vld [vmem:[%s1543_s0 + $0x2a0] sm:$0xff]  ;;  %v93_v10 = vld [vmem:[%s1543_s0 + $0x2a8] sm:$0xff] }
  0x1a   :  { %158 = vxpose.xlu1.b32.cont [7/16] (narrow) %v30_v12, 8  ;;  %v76_v9 = vld [vmem:[%s1543_s0 + $0x220] sm:$0xff]  ;;  %v77_v11 = vld [vmem:[%s1543_s0 + $0x228] sm:$0xff]  ;;  %v94_v12 = vld [vmem:[%s1543_s0 + $0x2b0] sm:$0xff] }
  0x1b   :  { %126 = vxpose.xlu0.b32.cont [7/16] (narrow) %v14_v13, 8  ;;  %v78_v13 = vld [vmem:[%s1543_s0 + $0x230] sm:$0xff] }
  0x1e   :  { %159 = vxpose.xlu1.b32.cont [8/16] (narrow) %v31_v14, 8  ;;  %v95_v14 = vld [vmem:[%s1543_s0 + $0x2b8] sm:$0xff] }
  0x1f   :  { %127 = vxpose.xlu0.b32.cont [8/16] (narrow) %v15_v15, 8  ;;  %v79_v15 = vld [vmem:[%s1543_s0 + $0x238] sm:$0xff] }
  0x22   :  { %160 = vxpose.xlu1.b32.cont [9/16] (narrow) %v32_v16, 8  ;;  %v96_v16 = vld [vmem:[%s1543_s0 + $0x2c0] sm:$0xff] }
  0x23   :  { %128 = vxpose.xlu0.b32.cont [9/16] (narrow) %v16_v17, 8  ;;  %v80_v17 = vld [vmem:[%s1543_s0 + $0x240] sm:$0xff] }
  0x26   :  { %161 = vxpose.xlu1.b32.cont [10/16] (narrow) %v33_v18, 8  ;;  %v97_v18 = vld [vmem:[%s1543_s0 + $0x2c8] sm:$0xff] }
  0x27   :  { %129 = vxpose.xlu0.b32.cont [10/16] (narrow) %v17_v19, 8  ;;  %v81_v19 = vld [vmem:[%s1543_s0 + $0x248] sm:$0xff] }
  0x2a   :  { %162 = vxpose.xlu1.b32.cont [11/16] (narrow) %v34_v20, 8  ;;  %v98_v20 = vld [vmem:[%s1543_s0 + $0x2d0] sm:$0xff] }
  0x2b   :  { %130 = vxpose.xlu0.b32.cont [11/16] (narrow) %v18_v21, 8  ;;  %v82_v21 = vld [vmem:[%s1543_s0 + $0x250] sm:$0xff] }
  0x2e   :  { %163 = vxpose.xlu1.b32.cont [12/16] (narrow) %v35_v22, 8  ;;  %v99_v22 = vld [vmem:[%s1543_s0 + $0x2d8] sm:$0xff] }
  0x2f   :  { %131 = vxpose.xlu0.b32.cont [12/16] (narrow) %v19_v23, 8  ;;  %v83_v23 = vld [vmem:[%s1543_s0 + $0x258] sm:$0xff] }
  0x32   :  { %164 = vxpose.xlu1.b32.cont [13/16] (narrow) %v36_v24, 8  ;;  %v100_v24 = vld [vmem:[%s1543_s0 + $0x2e0] sm:$0xff] }
  0x33   :  { %132 = vxpose.xlu0.b32.cont [13/16] (narrow) %v20_v25, 8  ;;  %v84_v25 = vld [vmem:[%s1543_s0 + $0x260] sm:$0xff] }
  0x36   :  { %165 = vxpose.xlu1.b32.cont [14/16] (narrow) %v37_v26, 8  ;;  %v101_v26 = vld [vmem:[%s1543_s0 + $0x2e8] sm:$0xff] }
  0x37   :  { %133 = vxpose.xlu0.b32.cont [14/16] (narrow) %v21_v27, 8  ;;  %v85_v27 = vld [vmem:[%s1543_s0 + $0x268] sm:$0xff] }
  0x3a   :  { %166 = vxpose.xlu1.b32.cont [15/16] (narrow) %v38_v28, 8  ;;  %v102_v28 = vld [vmem:[%s1543_s0 + $0x2f0] sm:$0xff] }
  0x3b   :  { %134 = vxpose.xlu0.b32.cont [15/16] (narrow) %v22_v29, 8  ;;  %v86_v29 = vld [vmem:[%s1543_s0 + $0x270] sm:$0xff] }
  0x3e   :  { %167 = vxpose.xlu1.b32.end [16/16] (narrow) %v39_v30, 8  ;;  %v103_v30 = vld [vmem:[%s1543_s0 + $0x2f8] sm:$0xff] }
  0x3f   :  { %135 = vxpose.xlu0.b32.end [16/16] (narrow) %v23_v31, 8  ;;  %v87_v31 = vld [vmem:[%s1543_s0 + $0x278] sm:$0xff] }
  0x42   :  { %216 = vxpose.xlu1.b32.start [1/16] (narrow) %v56_v32, 8  ;;  %v700_v32 = vld [vmem:[%s1543_s0 + $0x380] sm:$0xff] }
  0x43   :  { %184 = vxpose.xlu0.b32.start [1/16] (narrow) %v40_v33, 8  ;;  %v104_v33 = vld [vmem:[%s1543_s0 + $0x300] sm:$0xff] }
  0x46   :  { %217 = vxpose.xlu1.b32.cont [2/16] (narrow) %v57_v34, 8  ;;  %v701_v34 = vld [vmem:[%s1543_s0 + $0x388] sm:$0xff] }
  0x47   :  { %185 = vxpose.xlu0.b32.cont [2/16] (narrow) %v41_v35, 8  ;;  %v105_v35 = vld [vmem:[%s1543_s0 + $0x308] sm:$0xff] }
  0x4a   :  { %218 = vxpose.xlu1.b32.cont [3/16] (narrow) %v58_v36, 8  ;;  %v702_v36 = vld [vmem:[%s1543_s0 + $0x390] sm:$0xff] }
  0x4b   :  { %186 = vxpose.xlu0.b32.cont [3/16] (narrow) %v42_v37, 8  ;;  %v106_v37 = vld [vmem:[%s1543_s0 + $0x310] sm:$0xff] }
  0x4e   :  { %219 = vxpose.xlu1.b32.cont [4/16] (narrow) %v59_v38, 8  ;;  %v703_v38 = vld [vmem:[%s1543_s0 + $0x398] sm:$0xff] }
  0x4f   :  { %187 = vxpose.xlu0.b32.cont [4/16] (narrow) %v43_v39, 8  ;;  %v107_v39 = vld [vmem:[%s1543_s0 + $0x318] sm:$0xff] }
  0x52   :  { %220 = vxpose.xlu1.b32.cont [5/16] (narrow) %v60_v40, 8  ;;  %v704_v40 = vld [vmem:[%s1543_s0 + $0x3a0] sm:$0xff] }
  0x53   :  { %188 = vxpose.xlu0.b32.cont [5/16] (narrow) %v44_v41, 8  ;;  %v108_v41 = vld [vmem:[%s1543_s0 + $0x320] sm:$0xff] }
  0x56   :  { %221 = vxpose.xlu1.b32.cont [6/16] (narrow) %v61_v42, 8  ;;  %v705_v42 = vld [vmem:[%s1543_s0 + $0x3a8] sm:$0xff] }
  0x57   :  { %189 = vxpose.xlu0.b32.cont [6/16] (narrow) %v45_v43, 8  ;;  %v109_v43 = vld [vmem:[%s1543_s0 + $0x328] sm:$0xff] }
  0x5a   :  { %222 = vxpose.xlu1.b32.cont [7/16] (narrow) %v62_v44, 8  ;;  %v706_v44 = vld [vmem:[%s1543_s0 + $0x3b0] sm:$0xff] }
  0x5b   :  { %190 = vxpose.xlu0.b32.cont [7/16] (narrow) %v46_v45, 8  ;;  %v110_v45 = vld [vmem:[%s1543_s0 + $0x330] sm:$0xff] }
  0x5e   :  { %223 = vxpose.xlu1.b32.cont [8/16] (narrow) %v63_v46, 8  ;;  %v707_v46 = vld [vmem:[%s1543_s0 + $0x3b8] sm:$0xff] }
  0x5f   :  { %191 = vxpose.xlu0.b32.cont [8/16] (narrow) %v47_v47, 8  ;;  %v111_v47 = vld [vmem:[%s1543_s0 + $0x338] sm:$0xff] }
  0x62   :  { %224 = vxpose.xlu1.b32.cont [9/16] (narrow) %v64_v48, 8  ;;  %v708_v48 = vld [vmem:[%s1543_s0 + $0x3c0] sm:$0xff] }
  0x63   :  { %192 = vxpose.xlu0.b32.cont [9/16] (narrow) %v48_v49, 8  ;;  %v112_v49 = vld [vmem:[%s1543_s0 + $0x340] sm:$0xff] }
  0x66   :  { %225 = vxpose.xlu1.b32.cont [10/16] (narrow) %v65_v50, 8  ;;  %v709_v50 = vld [vmem:[%s1543_s0 + $0x3c8] sm:$0xff] }
  0x67   :  { %193 = vxpose.xlu0.b32.cont [10/16] (narrow) %v49_v51, 8  ;;  %v113_v51 = vld [vmem:[%s1543_s0 + $0x348] sm:$0xff] }
  0x6a   :  { %226 = vxpose.xlu1.b32.cont [11/16] (narrow) %v66_v52, 8  ;;  %v710_v52 = vld [vmem:[%s1543_s0 + $0x3d0] sm:$0xff] }
  0x6b   :  { %194 = vxpose.xlu0.b32.cont [11/16] (narrow) %v50_v53, 8  ;;  %v114_v53 = vld [vmem:[%s1543_s0 + $0x350] sm:$0xff] }
  0x6e   :  { %227 = vxpose.xlu1.b32.cont [12/16] (narrow) %v67_v54, 8  ;;  %v711_v54 = vld [vmem:[%s1543_s0 + $0x3d8] sm:$0xff] }
  0x6f   :  { %195 = vxpose.xlu0.b32.cont [12/16] (narrow) %v51_v55, 8  ;;  %v115_v55 = vld [vmem:[%s1543_s0 + $0x358] sm:$0xff] }
  0x72   :  { %228 = vxpose.xlu1.b32.cont [13/16] (narrow) %v68_v56, 8  ;;  %v712_v56 = vld [vmem:[%s1543_s0 + $0x3e0] sm:$0xff] }
  0x73   :  { %196 = vxpose.xlu0.b32.cont [13/16] (narrow) %v52_v57, 8  ;;  %v116_v57 = vld [vmem:[%s1543_s0 + $0x360] sm:$0xff] }
  0x76   :  { %229 = vxpose.xlu1.b32.cont [14/16] (narrow) %v69_v58, 8  ;;  %v713_v58 = vld [vmem:[%s1543_s0 + $0x3e8] sm:$0xff] }
  0x77   :  { %197 = vxpose.xlu0.b32.cont [14/16] (narrow) %v53_v59, 8  ;;  %v117_v59 = vld [vmem:[%s1543_s0 + $0x368] sm:$0xff] }
  0x7a   :  { %230 = vxpose.xlu1.b32.cont [15/16] (narrow) %v70_v60, 8  ;;  %v714_v60 = vld [vmem:[%s1543_s0 + $0x3f0] sm:$0xff] }
  0x7b   :  { %198 = vxpose.xlu0.b32.cont [15/16] (narrow) %v54_v61, 8  ;;  %v118_v61 = vld [vmem:[%s1543_s0 + $0x370] sm:$0xff] }
  0x7e   :  { %231 = vxpose.xlu1.b32.end [16/16] (narrow) %v71_v62, 8  ;;  %v715_v62 = vld [vmem:[%s1543_s0 + $0x3f8] sm:$0xff] }
  0x7f   :  { %199 = vxpose.xlu0.b32.end [16/16] (narrow) %v55_v63, 8  ;;  %v119_v63 = vld [vmem:[%s1543_s0 + $0x378] sm:$0xff] }
  0x82   :  { %280 = vxpose.xlu1.b32.start [1/16] (narrow) %v88_v0, 8  ;;  %v732_v0 = vld [vmem:[%s1543_s0 + $0x480] sm:$0xff] }
  0x83   :  { %248 = vxpose.xlu0.b32.start [1/16] (narrow) %v72_v1, 8  ;;  %v716_v1 = vld [vmem:[%s1543_s0 + $0x400] sm:$0xff] }
  0x86   :  { %281 = vxpose.xlu1.b32.cont [2/16] (narrow) %v89_v2, 8  ;;  %v733_v2 = vld [vmem:[%s1543_s0 + $0x488] sm:$0xff] }
  0x87   :  { %249 = vxpose.xlu0.b32.cont [2/16] (narrow) %v73_v3, 8  ;;  %v717_v3 = vld [vmem:[%s1543_s0 + $0x408] sm:$0xff] }
  0x8a   :  { %282 = vxpose.xlu1.b32.cont [3/16] (narrow) %v90_v4, 8  ;;  %v734_v4 = vld [vmem:[%s1543_s0 + $0x490] sm:$0xff] }
  0x8b   :  { %250 = vxpose.xlu0.b32.cont [3/16] (narrow) %v74_v5, 8  ;;  %v718_v5 = vld [vmem:[%s1543_s0 + $0x410] sm:$0xff] }
  0x8e   :  { %283 = vxpose.xlu1.b32.cont [4/16] (narrow) %v91_v6, 8  ;;  %v735_v6 = vld [vmem:[%s1543_s0 + $0x498] sm:$0xff] }
  0x8f   :  { %251 = vxpose.xlu0.b32.cont [4/16] (narrow) %v75_v7, 8  ;;  %v719_v7 = vld [vmem:[%s1543_s0 + $0x418] sm:$0xff] }
  0x92   :  { %284 = vxpose.xlu1.b32.cont [5/16] (narrow) %v92_v8, 8  ;;  %v736_v8 = vld [vmem:[%s1543_s0 + $0x4a0] sm:$0xff] }
  0x93   :  { %252 = vxpose.xlu0.b32.cont [5/16] (narrow) %v76_v9, 8  ;;  %v720_v9 = vld [vmem:[%s1543_s0 + $0x420] sm:$0xff] }
  0x96   :  { %285 = vxpose.xlu1.b32.cont [6/16] (narrow) %v93_v10, 8  ;;  %v737_v10 = vld [vmem:[%s1543_s0 + $0x4a8] sm:$0xff] }
  0x97   :  { %253 = vxpose.xlu0.b32.cont [6/16] (narrow) %v77_v11, 8  ;;  %v721_v11 = vld [vmem:[%s1543_s0 + $0x428] sm:$0xff] }
  0x9a   :  { %286 = vxpose.xlu1.b32.cont [7/16] (narrow) %v94_v12, 8  ;;  %v738_v12 = vld [vmem:[%s1543_s0 + $0x4b0] sm:$0xff] }
  0x9b   :  { %254 = vxpose.xlu0.b32.cont [7/16] (narrow) %v78_v13, 8  ;;  %v722_v13 = vld [vmem:[%s1543_s0 + $0x430] sm:$0xff] }
  0x9e   :  { %287 = vxpose.xlu1.b32.cont [8/16] (narrow) %v95_v14, 8  ;;  %v739_v14 = vld [vmem:[%s1543_s0 + $0x4b8] sm:$0xff] }
  0x9f   :  { %255 = vxpose.xlu0.b32.cont [8/16] (narrow) %v79_v15, 8  ;;  %v723_v15 = vld [vmem:[%s1543_s0 + $0x438] sm:$0xff] }
  0xa2   :  { %288 = vxpose.xlu1.b32.cont [9/16] (narrow) %v96_v16, 8  ;;  %v740_v16 = vld [vmem:[%s1543_s0 + $0x4c0] sm:$0xff] }
  0xa3   :  { %256 = vxpose.xlu0.b32.cont [9/16] (narrow) %v80_v17, 8  ;;  %v724_v17 = vld [vmem:[%s1543_s0 + $0x440] sm:$0xff] }
  0xa6   :  { %289 = vxpose.xlu1.b32.cont [10/16] (narrow) %v97_v18, 8  ;;  %v741_v18 = vld [vmem:[%s1543_s0 + $0x4c8] sm:$0xff] }
  0xa7   :  { %257 = vxpose.xlu0.b32.cont [10/16] (narrow) %v81_v19, 8  ;;  %v725_v19 = vld [vmem:[%s1543_s0 + $0x448] sm:$0xff] }
  0xaa   :  { %290 = vxpose.xlu1.b32.cont [11/16] (narrow) %v98_v20, 8  ;;  %v742_v20 = vld [vmem:[%s1543_s0 + $0x4d0] sm:$0xff] }
  0xab   :  { %258 = vxpose.xlu0.b32.cont [11/16] (narrow) %v82_v21, 8  ;;  %v726_v21 = vld [vmem:[%s1543_s0 + $0x450] sm:$0xff] }
  0xae   :  { %291 = vxpose.xlu1.b32.cont [12/16] (narrow) %v99_v22, 8  ;;  %v743_v22 = vld [vmem:[%s1543_s0 + $0x4d8] sm:$0xff] }
  0xaf   :  { %259 = vxpose.xlu0.b32.cont [12/16] (narrow) %v83_v23, 8  ;;  %v727_v23 = vld [vmem:[%s1543_s0 + $0x458] sm:$0xff] }
  0xb2   :  { %292 = vxpose.xlu1.b32.cont [13/16] (narrow) %v100_v24, 8  ;;  %v744_v24 = vld [vmem:[%s1543_s0 + $0x4e0] sm:$0xff] }
  0xb3   :  { %260 = vxpose.xlu0.b32.cont [13/16] (narrow) %v84_v25, 8  ;;  %v728_v25 = vld [vmem:[%s1543_s0 + $0x460] sm:$0xff] }
  0xb6   :  { %293 = vxpose.xlu1.b32.cont [14/16] (narrow) %v101_v26, 8  ;;  %v745_v26 = vld [vmem:[%s1543_s0 + $0x4e8] sm:$0xff] }
  0xb7   :  { %261 = vxpose.xlu0.b32.cont [14/16] (narrow) %v85_v27, 8  ;;  %v729_v27 = vld [vmem:[%s1543_s0 + $0x468] sm:$0xff] }
  0xba   :  { %294 = vxpose.xlu1.b32.cont [15/16] (narrow) %v102_v28, 8  ;;  %v746_v28 = vld [vmem:[%s1543_s0 + $0x4f0] sm:$0xff] }
  0xbb   :  { %262 = vxpose.xlu0.b32.cont [15/16] (narrow) %v86_v29, 8  ;;  %v730_v29 = vld [vmem:[%s1543_s0 + $0x470] sm:$0xff] }
  0xbe   :  { %295 = vxpose.xlu1.b32.end [16/16] (narrow) %v103_v30, 8  ;;  %v747_v30 = vld [vmem:[%s1543_s0 + $0x4f8] sm:$0xff] }
  0xbf   :  { %263 = vxpose.xlu0.b32.end [16/16] (narrow) %v87_v31, 8  ;;  %v731_v31 = vld [vmem:[%s1543_s0 + $0x478] sm:$0xff] }
  0xc2   :  { %464 = vxpose.xlu1.b32.start [1/16] (narrow) %v700_v32, 8  ;;  %v168_v32 = vpop.trf.xlu1 }
  0xc3   :  { %312 = vxpose.xlu0.b32.start [1/16] (narrow) %v104_v33, 8  ;;  %v136_v33 = vpop.trf.xlu0  ;;  %345 = vst [vmem:[%s1544_s1 + $0x8] sm:$0xff] %v168_v32  ;;  %v807_v32 = vld [vmem:[%s1543_s0 + $0x6d8] sm:$0xff] }
  0xc4   :  { %344 = vst [vmem:[%s1544_s1] sm:$0xff] %v136_v33  ;;  %v791_v33 = vld [vmem:[%s1543_s0 + $0x658] sm:$0xff] }
  0xc6   :  { %465 = vxpose.xlu1.b32.cont [2/16] (narrow) %v701_v34, 8  ;;  %v764_v34 = vld [vmem:[%s1543_s0 + $0x580] sm:$0xff] }
  0xc7   :  { %313 = vxpose.xlu0.b32.cont [2/16] (narrow) %v105_v35, 8  ;;  %v748_v35 = vld [vmem:[%s1543_s0 + $0x500] sm:$0xff] }
  0xca   :  { %466 = vxpose.xlu1.b32.cont [3/16] (narrow) %v702_v36, 8  ;;  %v232_v36 = vpop.trf.xlu1 }
  0xcb   :  { %314 = vxpose.xlu0.b32.cont [3/16] (narrow) %v106_v37, 8  ;;  %v200_v37 = vpop.trf.xlu0  ;;  %347 = vst [vmem:[%s1544_s1 + $0x18] sm:$0xff] %v232_v36  ;;  %v809_v36 = vld [vmem:[%s1543_s0 + $0x6e8] sm:$0xff] }
  0xcc   :  { %346 = vst [vmem:[%s1544_s1 + $0x10] sm:$0xff] %v200_v37  ;;  %v793_v37 = vld [vmem:[%s1543_s0 + $0x668] sm:$0xff] }
  0xce   :  { %467 = vxpose.xlu1.b32.cont [4/16] (narrow) %v703_v38, 8  ;;  %v765_v38 = vld [vmem:[%s1543_s0 + $0x588] sm:$0xff] }
  0xcf   :  { %315 = vxpose.xlu0.b32.cont [4/16] (narrow) %v107_v39, 8  ;;  %v749_v39 = vld [vmem:[%s1543_s0 + $0x508] sm:$0xff] }
  0xd2   :  { %468 = vxpose.xlu1.b32.cont [5/16] (narrow) %v704_v40, 8 }
  0xd3   :  { %316 = vxpose.xlu0.b32.cont [5/16] (narrow) %v108_v41, 8 }
  0xd6   :  { %469 = vxpose.xlu1.b32.cont [6/16] (narrow) %v705_v42, 8  ;;  %v766_v42 = vld [vmem:[%s1543_s0 + $0x590] sm:$0xff] }
  0xd7   :  { %317 = vxpose.xlu0.b32.cont [6/16] (narrow) %v109_v43, 8  ;;  %v750_v43 = vld [vmem:[%s1543_s0 + $0x510] sm:$0xff] }
  0xda   :  { %470 = vxpose.xlu1.b32.cont [7/16] (narrow) %v706_v44, 8 }
  0xdb   :  { %318 = vxpose.xlu0.b32.cont [7/16] (narrow) %v110_v45, 8 }
  0xde   :  { %471 = vxpose.xlu1.b32.cont [8/16] (narrow) %v707_v46, 8  ;;  %v767_v46 = vld [vmem:[%s1543_s0 + $0x598] sm:$0xff] }
  0xdf   :  { %319 = vxpose.xlu0.b32.cont [8/16] (narrow) %v111_v47, 8  ;;  %v751_v47 = vld [vmem:[%s1543_s0 + $0x518] sm:$0xff] }
  0xe2   :  { %472 = vxpose.xlu1.b32.cont [9/16] (narrow) %v708_v48, 8  ;;  %v768_v48 = vld [vmem:[%s1543_s0 + $0x5a0] sm:$0xff] }
  0xe3   :  { %320 = vxpose.xlu0.b32.cont [9/16] (narrow) %v112_v49, 8  ;;  %v752_v49 = vld [vmem:[%s1543_s0 + $0x520] sm:$0xff] }
  0xe6   :  { %473 = vxpose.xlu1.b32.cont [10/16] (narrow) %v709_v50, 8  ;;  %v769_v50 = vld [vmem:[%s1543_s0 + $0x5a8] sm:$0xff] }
  0xe7   :  { %321 = vxpose.xlu0.b32.cont [10/16] (narrow) %v113_v51, 8  ;;  %v753_v51 = vld [vmem:[%s1543_s0 + $0x528] sm:$0xff] }
  0xea   :  { %474 = vxpose.xlu1.b32.cont [11/16] (narrow) %v710_v52, 8  ;;  %v770_v52 = vld [vmem:[%s1543_s0 + $0x5b0] sm:$0xff] }
  0xeb   :  { %322 = vxpose.xlu0.b32.cont [11/16] (narrow) %v114_v53, 8  ;;  %v754_v53 = vld [vmem:[%s1543_s0 + $0x530] sm:$0xff] }
  0xee   :  { %475 = vxpose.xlu1.b32.cont [12/16] (narrow) %v711_v54, 8  ;;  %v771_v54 = vld [vmem:[%s1543_s0 + $0x5b8] sm:$0xff] }
  0xef   :  { %323 = vxpose.xlu0.b32.cont [12/16] (narrow) %v115_v55, 8  ;;  %v755_v55 = vld [vmem:[%s1543_s0 + $0x538] sm:$0xff] }
  0xf2   :  { %476 = vxpose.xlu1.b32.cont [13/16] (narrow) %v712_v56, 8  ;;  %v772_v56 = vld [vmem:[%s1543_s0 + $0x5c0] sm:$0xff] }
  0xf3   :  { %324 = vxpose.xlu0.b32.cont [13/16] (narrow) %v116_v57, 8  ;;  %v756_v57 = vld [vmem:[%s1543_s0 + $0x540] sm:$0xff] }
  0xf6   :  { %477 = vxpose.xlu1.b32.cont [14/16] (narrow) %v713_v58, 8  ;;  %v773_v58 = vld [vmem:[%s1543_s0 + $0x5c8] sm:$0xff] }
  0xf7   :  { %325 = vxpose.xlu0.b32.cont [14/16] (narrow) %v117_v59, 8  ;;  %v757_v59 = vld [vmem:[%s1543_s0 + $0x548] sm:$0xff] }
  0xfa   :  { %478 = vxpose.xlu1.b32.cont [15/16] (narrow) %v714_v60, 8  ;;  %v774_v60 = vld [vmem:[%s1543_s0 + $0x5d0] sm:$0xff] }
  0xfb   :  { %326 = vxpose.xlu0.b32.cont [15/16] (narrow) %v118_v61, 8  ;;  %v758_v61 = vld [vmem:[%s1543_s0 + $0x550] sm:$0xff] }
  0xfe   :  { %479 = vxpose.xlu1.b32.end [16/16] (narrow) %v715_v62, 8  ;;  %v775_v62 = vld [vmem:[%s1543_s0 + $0x5d8] sm:$0xff] }
  0xff   :  { %327 = vxpose.xlu0.b32.end [16/16] (narrow) %v119_v63, 8  ;;  %v759_v63 = vld [vmem:[%s1543_s0 + $0x558] sm:$0xff] }
 0x102   :  { %528 = vxpose.xlu1.b32.start [1/16] (narrow) %v732_v0, 8  ;;  %v296_v40 = vpop.trf.xlu1  ;;  %v776_v0 = vld [vmem:[%s1543_s0 + $0x5e0] sm:$0xff] }
 0x103   :  { %496 = vxpose.xlu0.b32.start [1/16] (narrow) %v716_v1, 8  ;;  %v264_v41 = vpop.trf.xlu0  ;;  %349 = vst [vmem:[%s1544_s1 + $0x28] sm:$0xff] %v296_v40  ;;  %v760_v1 = vld [vmem:[%s1543_s0 + $0x560] sm:$0xff]  ;;  %v811_v40 = vld [vmem:[%s1543_s0 + $0x6f8] sm:$0xff] }
 0x104   :  { %348 = vst [vmem:[%s1544_s1 + $0x20] sm:$0xff] %v264_v41  ;;  %v795_v41 = vld [vmem:[%s1543_s0 + $0x678] sm:$0xff] }
 0x106   :  { %529 = vxpose.xlu1.b32.cont [2/16] (narrow) %v733_v2, 8  ;;  %v777_v2 = vld [vmem:[%s1543_s0 + $0x5e8] sm:$0xff] }
 0x107   :  { %497 = vxpose.xlu0.b32.cont [2/16] (narrow) %v717_v3, 8  ;;  %v761_v3 = vld [vmem:[%s1543_s0 + $0x568] sm:$0xff] }
 0x10a   :  { %530 = vxpose.xlu1.b32.cont [3/16] (narrow) %v734_v4, 8  ;;  %v778_v4 = vld [vmem:[%s1543_s0 + $0x5f0] sm:$0xff] }
 0x10b   :  { %498 = vxpose.xlu0.b32.cont [3/16] (narrow) %v718_v5, 8  ;;  %v762_v5 = vld [vmem:[%s1543_s0 + $0x570] sm:$0xff] }
 0x10e   :  { %531 = vxpose.xlu1.b32.cont [4/16] (narrow) %v735_v6, 8  ;;  %v779_v6 = vld [vmem:[%s1543_s0 + $0x5f8] sm:$0xff] }
 0x10f   :  { %499 = vxpose.xlu0.b32.cont [4/16] (narrow) %v719_v7, 8  ;;  %v763_v7 = vld [vmem:[%s1543_s0 + $0x578] sm:$0xff] }
 0x112   :  { %532 = vxpose.xlu1.b32.cont [5/16] (narrow) %v736_v8, 8  ;;  %v796_v8 = vld [vmem:[%s1543_s0 + $0x680] sm:$0xff] }
 0x113   :  { %500 = vxpose.xlu0.b32.cont [5/16] (narrow) %v720_v9, 8  ;;  %v780_v9 = vld [vmem:[%s1543_s0 + $0x600] sm:$0xff] }
 0x116   :  { %533 = vxpose.xlu1.b32.cont [6/16] (narrow) %v737_v10, 8 }
 0x117   :  { %501 = vxpose.xlu0.b32.cont [6/16] (narrow) %v721_v11, 8 }
 0x11a   :  { %534 = vxpose.xlu1.b32.cont [7/16] (narrow) %v738_v12, 8  ;;  %v797_v12 = vld [vmem:[%s1543_s0 + $0x688] sm:$0xff] }
 0x11b   :  { %502 = vxpose.xlu0.b32.cont [7/16] (narrow) %v722_v13, 8  ;;  %v781_v13 = vld [vmem:[%s1543_s0 + $0x608] sm:$0xff] }
 0x11e   :  { %535 = vxpose.xlu1.b32.cont [8/16] (narrow) %v739_v14, 8  ;;  %v798_v14 = vld [vmem:[%s1543_s0 + $0x690] sm:$0xff] }
 0x11f   :  { %503 = vxpose.xlu0.b32.cont [8/16] (narrow) %v723_v15, 8  ;;  %v782_v15 = vld [vmem:[%s1543_s0 + $0x610] sm:$0xff] }
 0x122   :  { %536 = vxpose.xlu1.b32.cont [9/16] (narrow) %v740_v16, 8  ;;  %v799_v16 = vld [vmem:[%s1543_s0 + $0x698] sm:$0xff] }
 0x123   :  { %504 = vxpose.xlu0.b32.cont [9/16] (narrow) %v724_v17, 8  ;;  %v783_v17 = vld [vmem:[%s1543_s0 + $0x618] sm:$0xff] }
 0x126   :  { %537 = vxpose.xlu1.b32.cont [10/16] (narrow) %v741_v18, 8  ;;  %v800_v18 = vld [vmem:[%s1543_s0 + $0x6a0] sm:$0xff] }
 0x127   :  { %505 = vxpose.xlu0.b32.cont [10/16] (narrow) %v725_v19, 8  ;;  %v784_v19 = vld [vmem:[%s1543_s0 + $0x620] sm:$0xff] }
 0x12a   :  { %538 = vxpose.xlu1.b32.cont [11/16] (narrow) %v742_v20, 8  ;;  %v801_v20 = vld [vmem:[%s1543_s0 + $0x6a8] sm:$0xff] }
 0x12b   :  { %506 = vxpose.xlu0.b32.cont [11/16] (narrow) %v726_v21, 8  ;;  %v785_v21 = vld [vmem:[%s1543_s0 + $0x628] sm:$0xff] }
 0x12e   :  { %539 = vxpose.xlu1.b32.cont [12/16] (narrow) %v743_v22, 8  ;;  %v802_v22 = vld [vmem:[%s1543_s0 + $0x6b0] sm:$0xff] }
 0x12f   :  { %507 = vxpose.xlu0.b32.cont [12/16] (narrow) %v727_v23, 8  ;;  %v786_v23 = vld [vmem:[%s1543_s0 + $0x630] sm:$0xff] }
 0x132   :  { %540 = vxpose.xlu1.b32.cont [13/16] (narrow) %v744_v24, 8  ;;  %v803_v24 = vld [vmem:[%s1543_s0 + $0x6b8] sm:$0xff] }
 0x133   :  { %508 = vxpose.xlu0.b32.cont [13/16] (narrow) %v728_v25, 8  ;;  %v787_v25 = vld [vmem:[%s1543_s0 + $0x638] sm:$0xff] }
 0x136   :  { %541 = vxpose.xlu1.b32.cont [14/16] (narrow) %v745_v26, 8  ;;  %v804_v26 = vld [vmem:[%s1543_s0 + $0x6c0] sm:$0xff] }
 0x137   :  { %509 = vxpose.xlu0.b32.cont [14/16] (narrow) %v729_v27, 8  ;;  %v788_v27 = vld [vmem:[%s1543_s0 + $0x640] sm:$0xff] }
 0x13a   :  { %542 = vxpose.xlu1.b32.cont [15/16] (narrow) %v746_v28, 8  ;;  %v805_v28 = vld [vmem:[%s1543_s0 + $0x6c8] sm:$0xff] }
 0x13b   :  { %510 = vxpose.xlu0.b32.cont [15/16] (narrow) %v730_v29, 8  ;;  %v789_v29 = vld [vmem:[%s1543_s0 + $0x648] sm:$0xff] }
 0x13e   :  { %543 = vxpose.xlu1.b32.end [16/16] (narrow) %v747_v30, 8  ;;  %v806_v30 = vld [vmem:[%s1543_s0 + $0x6d0] sm:$0xff] }
 0x13f   :  { %511 = vxpose.xlu0.b32.end [16/16] (narrow) %v731_v31, 8  ;;  %v790_v31 = vld [vmem:[%s1543_s0 + $0x650] sm:$0xff] }
 0x142   :  { %592 = vxpose.xlu1.b32.start [1/16] (narrow) %v764_v34, 8  ;;  %v480_v44 = vpop.trf.xlu1  ;;  %v808_v34 = vld [vmem:[%s1543_s0 + $0x6e0] sm:$0xff] }
 0x143   :  { %560 = vxpose.xlu0.b32.start [1/16] (narrow) %v748_v35, 8  ;;  %v328_v45 = vpop.trf.xlu0  ;;  %812 = vst [vmem:[%s1544_s1 + $0x38] sm:$0xff] %v480_v44  ;;  %v792_v35 = vld [vmem:[%s1543_s0 + $0x660] sm:$0xff] }
 0x144   :  { %350 = vst [vmem:[%s1544_s1 + $0x30] sm:$0xff] %v328_v45 }
 0x146   :  { %593 = vxpose.xlu1.b32.cont [2/16] (narrow) %v765_v38, 8  ;;  %v810_v38 = vld [vmem:[%s1543_s0 + $0x6f0] sm:$0xff] }
 0x147   :  { %561 = vxpose.xlu0.b32.cont [2/16] (narrow) %v749_v39, 8  ;;  %v794_v39 = vld [vmem:[%s1543_s0 + $0x670] sm:$0xff] }
 0x14a   :  { %594 = vxpose.xlu1.b32.cont [3/16] (narrow) %v766_v42, 8 }
 0x14b   :  { %562 = vxpose.xlu0.b32.cont [3/16] (narrow) %v750_v43, 8 }
 0x14e   :  { %595 = vxpose.xlu1.b32.cont [4/16] (narrow) %v767_v46, 8 }
 0x14f   :  { %563 = vxpose.xlu0.b32.cont [4/16] (narrow) %v751_v47, 8 }
 0x152   :  { %596 = vxpose.xlu1.b32.cont [5/16] (narrow) %v768_v48, 8 }
 0x153   :  { %564 = vxpose.xlu0.b32.cont [5/16] (narrow) %v752_v49, 8 }
 0x156   :  { %597 = vxpose.xlu1.b32.cont [6/16] (narrow) %v769_v50, 8 }
 0x157   :  { %565 = vxpose.xlu0.b32.cont [6/16] (narrow) %v753_v51, 8 }
 0x15a   :  { %598 = vxpose.xlu1.b32.cont [7/16] (narrow) %v770_v52, 8 }
 0x15b   :  { %566 = vxpose.xlu0.b32.cont [7/16] (narrow) %v754_v53, 8 }
 0x15e   :  { %599 = vxpose.xlu1.b32.cont [8/16] (narrow) %v771_v54, 8 }
 0x15f   :  { %567 = vxpose.xlu0.b32.cont [8/16] (narrow) %v755_v55, 8 }
 0x162   :  { %600 = vxpose.xlu1.b32.cont [9/16] (narrow) %v772_v56, 8 }
 0x163   :  { %568 = vxpose.xlu0.b32.cont [9/16] (narrow) %v756_v57, 8 }
 0x166   :  { %601 = vxpose.xlu1.b32.cont [10/16] (narrow) %v773_v58, 8 }
 0x167   :  { %569 = vxpose.xlu0.b32.cont [10/16] (narrow) %v757_v59, 8 }
 0x16a   :  { %602 = vxpose.xlu1.b32.cont [11/16] (narrow) %v774_v60, 8 }
 0x16b   :  { %570 = vxpose.xlu0.b32.cont [11/16] (narrow) %v758_v61, 8 }
 0x16e   :  { %603 = vxpose.xlu1.b32.cont [12/16] (narrow) %v775_v62, 8 }
 0x16f   :  { %571 = vxpose.xlu0.b32.cont [12/16] (narrow) %v759_v63, 8 }
 0x172   :  { %604 = vxpose.xlu1.b32.cont [13/16] (narrow) %v776_v0, 8 }
 0x173   :  { %572 = vxpose.xlu0.b32.cont [13/16] (narrow) %v760_v1, 8 }
 0x176   :  { %605 = vxpose.xlu1.b32.cont [14/16] (narrow) %v777_v2, 8 }
 0x177   :  { %573 = vxpose.xlu0.b32.cont [14/16] (narrow) %v761_v3, 8 }
 0x17a   :  { %606 = vxpose.xlu1.b32.cont [15/16] (narrow) %v778_v4, 8 }
 0x17b   :  { %574 = vxpose.xlu0.b32.cont [15/16] (narrow) %v762_v5, 8 }
 0x17e   :  { %607 = vxpose.xlu1.b32.end [16/16] (narrow) %v779_v6, 8 }
 0x17f   :  { %575 = vxpose.xlu0.b32.end [16/16] (narrow) %v763_v7, 8 }
 0x182   :  { %656 = vxpose.xlu1.b32.start [1/16] (narrow) %v796_v8, 8  ;;  %v544_v10 = vpop.trf.xlu1 }
 0x183   :  { %624 = vxpose.xlu0.b32.start [1/16] (narrow) %v780_v9, 8  ;;  %v512_v11 = vpop.trf.xlu0  ;;  %814 = vst [vmem:[%s1544_s1 + $0x48] sm:$0xff] %v544_v10 }
 0x184   :  { %813 = vst [vmem:[%s1544_s1 + $0x40] sm:$0xff] %v512_v11 }
 0x186   :  { %657 = vxpose.xlu1.b32.cont [2/16] (narrow) %v797_v12, 8 }
 0x187   :  { %625 = vxpose.xlu0.b32.cont [2/16] (narrow) %v781_v13, 8 }
 0x18a   :  { %658 = vxpose.xlu1.b32.cont [3/16] (narrow) %v798_v14, 8 }
 0x18b   :  { %626 = vxpose.xlu0.b32.cont [3/16] (narrow) %v782_v15, 8 }
 0x18e   :  { %659 = vxpose.xlu1.b32.cont [4/16] (narrow) %v799_v16, 8 }
 0x18f   :  { %627 = vxpose.xlu0.b32.cont [4/16] (narrow) %v783_v17, 8 }
 0x192   :  { %660 = vxpose.xlu1.b32.cont [5/16] (narrow) %v800_v18, 8 }
 0x193   :  { %628 = vxpose.xlu0.b32.cont [5/16] (narrow) %v784_v19, 8 }
 0x196   :  { %661 = vxpose.xlu1.b32.cont [6/16] (narrow) %v801_v20, 8 }
 0x197   :  { %629 = vxpose.xlu0.b32.cont [6/16] (narrow) %v785_v21, 8 }
 0x19a   :  { %662 = vxpose.xlu1.b32.cont [7/16] (narrow) %v802_v22, 8 }
 0x19b   :  { %630 = vxpose.xlu0.b32.cont [7/16] (narrow) %v786_v23, 8 }
 0x19e   :  { %663 = vxpose.xlu1.b32.cont [8/16] (narrow) %v803_v24, 8 }
 0x19f   :  { %631 = vxpose.xlu0.b32.cont [8/16] (narrow) %v787_v25, 8 }
 0x1a2   :  { %664 = vxpose.xlu1.b32.cont [9/16] (narrow) %v804_v26, 8 }
 0x1a3   :  { %632 = vxpose.xlu0.b32.cont [9/16] (narrow) %v788_v27, 8 }
 0x1a6   :  { %665 = vxpose.xlu1.b32.cont [10/16] (narrow) %v805_v28, 8 }
 0x1a7   :  { %633 = vxpose.xlu0.b32.cont [10/16] (narrow) %v789_v29, 8 }
 0x1aa   :  { %666 = vxpose.xlu1.b32.cont [11/16] (narrow) %v806_v30, 8 }
 0x1ab   :  { %634 = vxpose.xlu0.b32.cont [11/16] (narrow) %v790_v31, 8 }
 0x1ae   :  { %667 = vxpose.xlu1.b32.cont [12/16] (narrow) %v807_v32, 8 }
 0x1af   :  { %635 = vxpose.xlu0.b32.cont [12/16] (narrow) %v791_v33, 8 }
 0x1b2   :  { %668 = vxpose.xlu1.b32.cont [13/16] (narrow) %v808_v34, 8 }
 0x1b3   :  { %636 = vxpose.xlu0.b32.cont [13/16] (narrow) %v792_v35, 8 }
 0x1b6   :  { %669 = vxpose.xlu1.b32.cont [14/16] (narrow) %v809_v36, 8 }
 0x1b7   :  { %637 = vxpose.xlu0.b32.cont [14/16] (narrow) %v793_v37, 8 }
 0x1ba   :  { %670 = vxpose.xlu1.b32.cont [15/16] (narrow) %v810_v38, 8 }
 0x1bb   :  { %638 = vxpose.xlu0.b32.cont [15/16] (narrow) %v794_v39, 8 }
 0x1be   :  { %671 = vxpose.xlu1.b32.end [16/16] (narrow) %v811_v40, 8 }
 0x1bf   :  { %639 = vxpose.xlu0.b32.end [16/16] (narrow) %v795_v41, 8 }
 0x1c2   :  { %v608_v42 = vpop.trf.xlu1 }
 0x1c3   :  { %v576_v43 = vpop.trf.xlu0  ;;  %816 = vst [vmem:[%s1544_s1 + $0x58] sm:$0xff] %v608_v42 }
 0x1c4   :  { %815 = vst [vmem:[%s1544_s1 + $0x50] sm:$0xff] %v576_v43 }
 0x202   :  { %v672_v44 = vpop.trf.xlu1 }
 0x203   :  { %v640_v45 = vpop.trf.xlu0  ;;  %818 = vst [vmem:[%s1544_s1 + $0x68] sm:$0xff] %v672_v44 }
 0x204   :  { %817 = vst [vmem:[%s1544_s1 + $0x60] sm:$0xff] %v640_v45 }

</bundles_post_ra>
